<compile_context>
chip_gen: v7x
topology: tpu7x:2x2x1
jax: 0.10.0
libtpu: 0.0.40
codegen_flags: <defaults>
</compile_context>

<pallas_src>
import functools
import math

import jax
import jax.numpy as jnp
from jax import lax
from jax.experimental import pallas as pl
from jax.experimental.pallas import tpu as pltpu


def _round_up(x, m):
    return ((x + m - 1) // m) * m


def classifier_kernel(x_ref, w1_ref, b1_ref, w2_ref, out_ref, *, inv_temp):
    # fc1 on the MXU: [TM, Dp] @ [Dp, H] -> f32 accumulator, + bias (f32).
    h = jnp.dot(x_ref[...], w1_ref[...], preferred_element_type=jnp.float32)
    h = h + b1_ref[...]

    # F.normalize(p=2, dim=1) / temp, fused:
    #   1 / max(sqrt(s), 1e-12) == rsqrt(max(s, 1e-24))   (EUP rsqrt)
    # and 1/temp is folded into the [TM, 1] scale so only ONE [TM, H]
    # broadcast-multiply remains.
    sumsq = jnp.sum(h * h, axis=-1, keepdims=True)
    scale = lax.rsqrt(jnp.maximum(sumsq, 1e-24)) * inv_temp
    f = (h * scale).astype(w2_ref.dtype)

    # fc2 (bias=False) on the MXU: [TM, H] @ [H, Cp]; Cp % 128 == 0 so the
    # output store is lane-dense (no masked vst).
    out_ref[...] = jnp.dot(f, w2_ref[...], preferred_element_type=jnp.float32)


def classifier_forward(x, w1, b1, w2, temp=0.05, *, tm=512,
                       compute_dtype=jnp.bfloat16,
                       vmem_budget_bytes=12 * 1024 * 1024):
    """Forward of `Classifier` (reverse only changes backward => identity here).

    x: [B, D], w1: [D, H] (= fc1.weight.T), b1: [H] or [1, H],
    w2: [H, C] (= fc2.weight.T).  Returns [B, C] float32.
    """
    B, D = x.shape
    H = w1.shape[1]
    C = w2.shape[1]

    # Pad contraction dim and class dim to lane-dense multiples of 128.
    Dp = _round_up(D, 128)
    Cp = _round_up(C, 128)

    itemsize = jnp.dtype(compute_dtype).itemsize

    # Batch tile: as big as possible (fewer grid steps, better MXU fill) while
    # fitting a conservative VMEM budget (also safe under v7x's 64 MiB VMEM and
    # v5e's 16 MiB default scoped limit). Weights are double-buffered by the
    # default pipeline; x / out tiles stream per step.
    weight_bytes = 2 * (Dp * H + H * Cp) * itemsize + 2 * H * 4
    per_row_bytes = 2 * (Dp * itemsize + Cp * 4) + H * 4 + H * itemsize
    tm_cap = max(8, int((vmem_budget_bytes - weight_bytes) // max(per_row_bytes, 1)))
    tm_eff = int(min(tm, tm_cap, _round_up(B, 8)))
    tm_eff = max(8, (tm_eff // 8) * 8)
    Bp = _round_up(B, tm_eff)

    # Wrapper-side pad + cast (zero rows/cols are sliced away afterwards).
    x_p = jnp.zeros((Bp, Dp), compute_dtype).at[:B, :D].set(x.astype(compute_dtype))
    w1_p = jnp.zeros((Dp, H), compute_dtype).at[:D, :].set(w1.astype(compute_dtype))
    b1_p = jnp.reshape(b1, (1, H)).astype(jnp.float32)  # bias stays f32 (added to f32 accum)
    w2_p = jnp.zeros((H, Cp), compute_dtype).at[:, :C].set(w2.astype(compute_dtype))

    kernel = functools.partial(classifier_kernel, inv_temp=float(1.0 / temp))

    out = pl.pallas_call(
        kernel,
        out_shape=jax.ShapeDtypeStruct((Bp, Cp), jnp.float32),
        grid_spec=pltpu.PrefetchScalarGridSpec(
            num_scalar_prefetch=0,
            grid=(Bp // tm_eff,),
            in_specs=[
                pl.BlockSpec((tm_eff, Dp), lambda i: (i, 0)),  # x tile (streamed over batch)
                # Weights/bias are loop-invariant (constant index_map). For very
                # large H/C, mark these pipeline_mode=pl.Buffered(1) to avoid the
                # 2x double-buffer footprint; at these sizes it is negligible.
                pl.BlockSpec((Dp, H), lambda i: (0, 0)),       # W1 (whole, resident)
                pl.BlockSpec((1, H), lambda i: (0, 0)),        # b1 (whole, resident)
                pl.BlockSpec((H, Cp), lambda i: (0, 0)),       # W2 (whole, zero-padded cols)
            ],
            out_specs=pl.BlockSpec((tm_eff, Cp), lambda i: (i, 0)),
        ),
        compiler_params=pltpu.CompilerParams(
            dimension_semantics=("parallel",),  # batch axis shardable across TCs (v7x megacore)
        ),
    )(x_p, w1_p, b1_p, w2_p)

    return out[:B, :C]


def reference_forward(x, w1, b1, w2, temp=0.05, compute_dtype=jnp.float32):
    """Pure-JAX mirror of the module's math at the given operand precision."""
    cd = compute_dtype
    h = jnp.dot(x.astype(cd), w1.astype(cd), preferred_element_type=jnp.float32)
    h = h + jnp.reshape(b1, (1, -1)).astype(jnp.float32)
    norm = jnp.sqrt(jnp.sum(h * h, axis=-1, keepdims=True))
    f = h / jnp.maximum(norm, 1e-12) / temp
    return jnp.dot(f.astype(cd), w2.astype(cd), preferred_element_type=jnp.float32)


if __name__ == "__main__":
    # Small shapes consistent with Classifier(in_dim=32, hidden_dim=128, num_classes=65).
    D, H, C = 32, 128, 65
    temp = 0.05

    key = jax.random.PRNGKey(0)
    kx, kw1, kb1, kw2 = jax.random.split(key, 4)

    # Params mimicking nn.Linear defaults: uniform(-1/sqrt(fan_in), 1/sqrt(fan_in)).
    bound1 = 1.0 / math.sqrt(D)
    w1 = jax.random.uniform(kw1, (D, H), minval=-bound1, maxval=bound1, dtype=jnp.float32)
    b1 = jax.random.uniform(kb1, (H,), minval=-bound1, maxval=bound1, dtype=jnp.float32)
    bound2 = 1.0 / math.sqrt(H)
    w2 = jax.random.uniform(kw2, (H, C), minval=-bound2, maxval=bound2, dtype=jnp.float32)

    # B=8 is the plain path; B=12 exercises the batch-padding (non-divisible) path.
    for B in (8, 12):
        x = jax.random.normal(jax.random.fold_in(kx, B), (B, D), dtype=jnp.float32)

        out = classifier_forward(x, w1, b1, w2, temp=temp)  # bf16 operands, f32 accumulate
        out = jax.block_until_ready(out)

        ref = reference_forward(x, w1, b1, w2, temp=temp, compute_dtype=jnp.bfloat16)
        assert out.shape == (B, C) and out.dtype == jnp.float32
        assert jnp.allclose(out, ref, atol=1e-2, rtol=1e-2), f"mismatch vs reference (B={B})"

    print("KERNEL_OK")
</pallas_src>

<mosaic_0001>
module attributes {stable_mosaic.version = 11 : i64} {
  func.func @classifier_kernel(%arg0: i32, %arg1: memref<8x128xbf16, #tpu.memory_space<vmem>>, %arg2: memref<128x128xbf16, #tpu.memory_space<vmem>>, %arg3: memref<1x128xf32, #tpu.memory_space<vmem>>, %arg4: memref<128x128xbf16, #tpu.memory_space<vmem>>, %arg5: memref<8x128xf32, #tpu.memory_space<vmem>>) attributes {dimension_semantics = [#tpu.dimension_semantics<parallel>], iteration_bounds = array<i64: 1>, scalar_prefetch = 0 : i64, scratch_operands = 0 : i64, tpu.core_type = #tpu.core_type<tc>, window_params = [{transform_indices = @transform_0, window_bounds = array<i64: 8, 128>}, {pipeline_mode = #tpu.pipeline_mode<synchronous>, transform_indices = @transform_1, window_bounds = array<i64: 128, 128>}, {pipeline_mode = #tpu.pipeline_mode<synchronous>, transform_indices = @transform_2, window_bounds = array<i64: 1, 128>}, {pipeline_mode = #tpu.pipeline_mode<synchronous>, transform_indices = @transform_3, window_bounds = array<i64: 128, 128>}, {transform_indices = @transform_4, window_bounds = array<i64: 8, 128>}]} {
    %c0 = arith.constant 0 : index
    %c0_0 = arith.constant 0 : index
    %0 = vector.load %arg1[%c0, %c0_0] : memref<8x128xbf16, #tpu.memory_space<vmem>>, vector<8x128xbf16>
    %c0_1 = arith.constant 0 : index
    %c0_2 = arith.constant 0 : index
    %1 = vector.load %arg2[%c0_1, %c0_2] : memref<128x128xbf16, #tpu.memory_space<vmem>>, vector<128x128xbf16>
    %cst = arith.constant dense<0.000000e+00> : vector<8x128xf32>
    %2 = tpu.matmul %0, %1, %cst {dimension_numbers = #tpu.dot_dimension_numbers<[1], [0], [0], [1], [0, 0, 1, 1], [], []>} : vector<8x128xbf16>, vector<128x128xbf16>, vector<8x128xf32> -> vector<8x128xf32>
    %c0_3 = arith.constant 0 : index
    %c0_4 = arith.constant 0 : index
    %3 = vector.load %arg3[%c0_3, %c0_4] : memref<1x128xf32, #tpu.memory_space<vmem>>, vector<1x128xf32>
    %4 = vector.broadcast %3 : vector<1x128xf32> to vector<8x128xf32>
    %5 = arith.addf %2, %4 : vector<8x128xf32>
    %6 = arith.mulf %5, %5 : vector<8x128xf32>
    %cst_5 = arith.constant dense<0.000000e+00> : vector<8xf32>
    %7 = vector.multi_reduction <add>, %6, %cst_5 [1] : vector<8x128xf32> to vector<8xf32>
    %8 = vector.shape_cast %7 : vector<8xf32> to vector<8x1xf32>
    %cst_6 = arith.constant 1.000000e-24 : f32
    %9 = vector.broadcast %cst_6 : f32 to vector<8x1xf32>
    %10 = arith.maximumf %8, %9 : vector<8x1xf32>
    %11 = math.rsqrt %10 : vector<8x1xf32>
    %cst_7 = arith.constant 2.000000e+01 : f32
    %12 = vector.broadcast %cst_7 : f32 to vector<8x1xf32>
    %13 = arith.mulf %11, %12 : vector<8x1xf32>
    %14 = vector.broadcast %13 : vector<8x1xf32> to vector<8x128xf32>
    %15 = arith.mulf %5, %14 : vector<8x128xf32>
    %16 = arith.truncf %15 : vector<8x128xf32> to vector<8x128xbf16>
    %c0_8 = arith.constant 0 : index
    %c0_9 = arith.constant 0 : index
    %17 = vector.load %arg4[%c0_8, %c0_9] : memref<128x128xbf16, #tpu.memory_space<vmem>>, vector<128x128xbf16>
    %cst_10 = arith.constant dense<0.000000e+00> : vector<8x128xf32>
    %18 = tpu.matmul %16, %17, %cst_10 {dimension_numbers = #tpu.dot_dimension_numbers<[1], [0], [0], [1], [0, 0, 1, 1], [], []>} : vector<8x128xbf16>, vector<128x128xbf16>, vector<8x128xf32> -> vector<8x128xf32>
    %c0_11 = arith.constant 0 : index
    %c0_12 = arith.constant 0 : index
    %19 = vector.load %arg5[%c0_11, %c0_12] : memref<8x128xf32, #tpu.memory_space<vmem>>, vector<8x128xf32>
    tpu.vector_store %arg5[%c0_11, %c0_12], %18 {strides = array<i32>} : memref<8x128xf32, #tpu.memory_space<vmem>>, vector<8x128xf32>,
    return
  }
  func.func @transform_0(%arg0: i32) -> (i32, i32) {
    %c0_i32 = arith.constant 0 : i32
    %c0_i32_0 = arith.constant 0 : i32
    return %arg0, %c0_i32 : i32, i32
  }
  func.func @transform_1(%arg0: i32) -> (i32, i32) {
    %c0_i32 = arith.constant 0 : i32
    %c0_i32_0 = arith.constant 0 : i32
    %c0_i32_1 = arith.constant 0 : i32
    return %c0_i32, %c0_i32_0 : i32, i32
  }
  func.func @transform_2(%arg0: i32) -> (i32, i32) {
    %c0_i32 = arith.constant 0 : i32
    %c0_i32_0 = arith.constant 0 : i32
    %c0_i32_1 = arith.constant 0 : i32
    return %c0_i32, %c0_i32_0 : i32, i32
  }
  func.func @transform_3(%arg0: i32) -> (i32, i32) {
    %c0_i32 = arith.constant 0 : i32
    %c0_i32_0 = arith.constant 0 : i32
    %c0_i32_1 = arith.constant 0 : i32
    return %c0_i32, %c0_i32_0 : i32, i32
  }
  func.func @transform_4(%arg0: i32) -> (i32, i32) {
    %c0_i32 = arith.constant 0 : i32
    %c0_i32_0 = arith.constant 0 : i32
    return %arg0, %c0_i32 : i32, i32
  }
}

</mosaic_0001>

<bundles_post_ra>
// kernel: tpu_custom_call.1
= control target key start
LH: loop header
LB: loop body
LE: loop exit
PB: predicated region body
PF: predicated region fallthrough
CT: control target
= control target key end

     0   :  { %9 = vsyncpa [#allocation3], 0  ;;  %s584_s0 = inlined_call_operand.hbm [shape: bf16[8,128], index: 0, kind: input, shape index: {}]   ;;  %s585_s1 = inlined_call_operand.hbm [shape: bf16[128,128], index: 1, kind: input, shape index: {}]   ;;  %s586_s2 = inlined_call_operand.vmem [shape: f32[1,128], index: 2, kind: input, shape index: {}]   ;;  %s587_s3 = inlined_call_operand.hbm [shape: bf16[128,128], index: 3, kind: input, shape index: {}]   ;;  %s588_s4 = inlined_call_operand.hbm [shape: f32[8,128], index: 4, kind: output, shape index: {}]  }
   0x1   :  { %10 = vsyncpa [#allocation6], 0 }
   0x2   :  { %11 = vsyncpa [#allocation4], 0  ;;  %s494_s15 = smov [#allocation5]   ;;  %s400_s19 = scalar_lea.hbm %s585_s1, 1024 }
   0x3   :  { %s27_s16 = sshll.u32 %s494_s15, 4  ;;  %p401_p0 = scmp.ne.s32.totalorder %s585_s1, %s400_s19  ;;  %s28_s16 = int_to_ptr.vmem [resolvable:$true] %s27_s16 }
   0x4   :  { %p404_p1 = scmp.lt.u32.totalorder %s400_s19, %s585_s1 }
   0x6   :  { %p406_p2 = pnand %p404_p1, %p401_p0 }
   0x8   :  { %409 = shalt.err (!%p406_p2)
}
   0x9   :  { %s410_s24 = scalar_lea.vmem %s28_s16, 1024  ;;  %p415_p4 = scmp.lt.s32.totalorder %s28_s16, %s28_s16 }
   0xa   :  { %p411_p3 = scmp.ne.s32.totalorder %s28_s16, %s410_s24  ;;  %p416_p5 = scmp.lt.s32.totalorder %s410_s24, %s410_s24 }
   0xc   :  { %p417_p6 = por %p416_p5, %p415_p4 }
   0xe   :  { %p418_p7 = pnand %p417_p6, %p411_p3 }
  0x10   :  { %421 = shalt.err (!%p418_p7)
}
  0x11   :  { %s495_s25 = smov 64   ;;  %s496_s26 = smov 4  }
  0x12   :  { %33 = dma.hbm_to_vmem [thread:$0]  %s585_s1, 1024, %s28_s16, [#allocation6], %s495_s25, %s495_s25, %s496_s26  }
  0x13   :  { %s497_s29 = smov [#allocation2]   ;;  %s498_s5 = smov [#allocation7]  }
  0x14   :  { %s18_s30 = sshll.u32 %s497_s29, 4  ;;  %s41_s6 = sshll.u32 %s498_s5, 4  ;;  %s19_s30 = int_to_ptr.vmem [resolvable:$true] %s18_s30  ;;  %s42_s6 = int_to_ptr.vmem [resolvable:$true] %s41_s6 }
  0x15   :  { %s422_s9 = scalar_lea.hbm %s584_s0, 64 }
  0x16   :  { %p423_p8 = scmp.ne.s32.totalorder %s584_s0, %s422_s9  ;;  %p426_p9 = scmp.lt.u32.totalorder %s422_s9, %s584_s0 }
  0x18   :  { %p428_p10 = pnand %p426_p9, %p423_p8 }
  0x1a   :  { %431 = shalt.err (!%p428_p10)
}
  0x1b   :  { %s432_s1 = scalar_lea.vmem %s19_s30, 64  ;;  %p437_p12 = scmp.lt.s32.totalorder %s19_s30, %s19_s30 }
  0x1c   :  { %p433_p11 = scmp.ne.s32.totalorder %s19_s30, %s432_s1  ;;  %p438_p13 = scmp.lt.s32.totalorder %s432_s1, %s432_s1 }
  0x1e   :  { %p439_p0 = por %p438_p13, %p437_p12 }
  0x20   :  { %p440_p1 = pnand %p439_p0, %p433_p11 }
  0x22   :  { %443 = shalt.err (!%p440_p1)
}
  0x23   :  { %21 = dma.hbm_to_vmem [thread:$0]  %s584_s0, 64, %s19_s30, [#allocation3]  }
  0x24   :  { %s444_s18 = scalar_lea.hbm %s587_s3, 1024 }
  0x25   :  { %p445_p2 = scmp.ne.s32.totalorder %s587_s3, %s444_s18  ;;  %p448_p3 = scmp.lt.u32.totalorder %s444_s18, %s587_s3 }
  0x27   :  { %p450_p4 = pnand %p448_p3, %p445_p2 }
  0x29   :  { %453 = shalt.err (!%p450_p4)
}
  0x2a   :  { %s454_s23 = scalar_lea.vmem %s42_s6, 1024  ;;  %p459_p6 = scmp.lt.s32.totalorder %s42_s6, %s42_s6 }
  0x2b   :  { %p455_p5 = scmp.ne.s32.totalorder %s42_s6, %s454_s23  ;;  %p460_p7 = scmp.lt.s32.totalorder %s454_s23, %s454_s23 }
  0x2d   :  { %p461_p8 = por %p460_p7, %p459_p6 }
  0x2f   :  { %p462_p9 = pnand %p461_p8, %p455_p5 }
  0x31   :  { %465 = shalt.err (!%p462_p9)
}
  0x32   :  { %47 = dma.hbm_to_vmem [thread:$0]  %s587_s3, 1024, %s42_s6, [#allocation6], %s495_s25, %s495_s25, %s496_s26  }
  0x33   :  { %488 = dma.done.wait [#allocation3], 64  }
  0x34   :  { %489 = vsyncadd [#allocation3], 4294967232 }
  0x35   :  { %490 = dma.done.wait [#allocation6], 2048  }
  0x36   :  { %491 = vsyncadd [#allocation6], 4294965248  ;;  %v499_v0 = vmov 0.0   ;;  %vm500_vm0 = vmmov 0   ;;  %v382_v1 = vld [vmem:[#allocation5] sm:$0xff]   ;;  %v383_v2 = vld [vmem:[#allocation5 + $0x8] sm:$0xff]  }
  0x37   :  { %334 = vmatprep.subr.bf16.mxu0 %v499_v0  ;;  %350 = vmatprep.mubr.msk.bf16.mxu0 %vm500_vm0, %v499_v0  ;;  %v384_v3 = vld [vmem:[#allocation5 + $0x10] sm:$0xff]   ;;  %v385_v4 = vld [vmem:[#allocation5 + $0x18] sm:$0xff]   ;;  %v386_v5 = vld [vmem:[#allocation5 + $0x20] sm:$0xff]  }
  0x38   :  { %354 = vmatprep.subr.bf16.mxu1 %v499_v0  ;;  %370 = vmatprep.mubr.msk.bf16.mxu1 %vm500_vm0, %v499_v0  ;;  %v387_v6 = vld [vmem:[#allocation5 + $0x28] sm:$0xff]   ;;  %v388_v7 = vld [vmem:[#allocation5 + $0x30] sm:$0xff]   ;;  %v389_v8 = vld [vmem:[#allocation5 + $0x38] sm:$0xff]  }
  0x39   :  { %335 = vmatpush3.bf16.msra.mxu0 %v382_v1  ;;  %v58_v9 = vld [vmem:[#allocation2] sm:$0xf]  ;;  %v390_v10 = vld [vmem:[#allocation7] sm:$0xff]   ;;  %v391_v11 = vld [vmem:[#allocation7 + $0x8] sm:$0xff]  }
  0x3a   :  { %336 = vmatprep.subr.bf16.mxu0 %v499_v0  ;;  %355 = vmatpush3.bf16.msra.mxu1 %v390_v10  ;;  %v392_v12 = vld [vmem:[#allocation7 + $0x10] sm:$0xff]   ;;  %v299_v13 = vld [vmem:[%s586_s2] ss:$0 sm:$0xff]  ;;  %v394_v21 = vld [vmem:[#allocation7 + $0x20] sm:$0xff]   ;;  %s501_s2 = smov [#allocation8]  }
  0x3b   :  { %356 = vmatprep.subr.bf16.mxu1 %v499_v0  ;;  %v393_v20 = vld [vmem:[#allocation7 + $0x18] sm:$0xff]   ;;  %v395_v22 = vld [vmem:[#allocation7 + $0x28] sm:$0xff]   ;;  %v396_v23 = vld [vmem:[#allocation7 + $0x30] sm:$0xff]   ;;  %s289_s26 = sshll.u32 %s501_s2, 4  ;;  %s290_s26 = int_to_ptr.vmem [resolvable:$true] %s289_s26 }
  0x3c   :  { %v397_v24 = vld [vmem:[#allocation7 + $0x38] sm:$0xff]   ;;  %s466_s27 = scalar_lea.vmem %s290_s26, 128  ;;  %p471_p11 = scmp.lt.s32.totalorder %s290_s26, %s290_s26 }
  0x3d   :  { %337 = vmatpush3.bf16.msra.mxu0 %v383_v2  ;;  %p467_p10 = scmp.ne.s32.totalorder %s290_s26, %s466_s27  ;;  %p472_p12 = scmp.lt.s32.totalorder %s466_s27, %s466_s27 }
  0x3e   :  { %338 = vmatprep.subr.bf16.mxu0 %v499_v0  ;;  %357 = vmatpush3.bf16.msra.mxu1 %v391_v11 }
  0x3f   :  { %358 = vmatprep.subr.bf16.mxu1 %v499_v0  ;;  %p473_p13 = por %p472_p12, %p471_p11 }
  0x41   :  { %339 = vmatpush3.bf16.msra.mxu0 %v384_v3  ;;  %p474_p0 = pnand %p473_p13, %p467_p10 }
  0x42   :  { %340 = vmatprep.subr.bf16.mxu0 %v499_v0  ;;  %359 = vmatpush3.bf16.msra.mxu1 %v392_v12 }
  0x43   :  { %360 = vmatprep.subr.bf16.mxu1 %v499_v0 }
  0x45   :  { %341 = vmatpush3.bf16.msra.mxu0 %v385_v4 }
  0x46   :  { %342 = vmatprep.subr.bf16.mxu0 %v499_v0  ;;  %361 = vmatpush3.bf16.msra.mxu1 %v393_v20 }
  0x47   :  { %362 = vmatprep.subr.bf16.mxu1 %v499_v0 }
  0x49   :  { %343 = vmatpush3.bf16.msra.mxu0 %v386_v5 }
  0x4a   :  { %344 = vmatprep.subr.bf16.mxu0 %v499_v0  ;;  %363 = vmatpush3.bf16.msra.mxu1 %v394_v21 }
  0x4b   :  { %364 = vmatprep.subr.bf16.mxu1 %v499_v0 }
  0x4d   :  { %345 = vmatpush3.bf16.msra.mxu0 %v387_v6 }
  0x4e   :  { %346 = vmatprep.subr.bf16.mxu0 %v499_v0  ;;  %365 = vmatpush3.bf16.msra.mxu1 %v395_v22 }
  0x4f   :  { %366 = vmatprep.subr.bf16.mxu1 %v499_v0 }
  0x51   :  { %347 = vmatpush3.bf16.msra.mxu0 %v388_v7 }
  0x52   :  { %348 = vmatprep.subr.bf16.mxu0 %v499_v0  ;;  %367 = vmatpush3.bf16.msra.mxu1 %v396_v23 }
  0x53   :  { %368 = vmatprep.subr.bf16.mxu1 %v499_v0 }
  0x55   :  { %349 = vmatpush3.bf16.msra.mxu0 %v389_v8 }
  0x56   :  { %369 = vmatpush3.bf16.msra.mxu1 %v397_v24 }
  0x58   :  { %351 = vmatmul.mubr.bf16.vlgmr.msra.gmra.mrb[0].mxu0 %v58_v9 }
 0x12b   :  { %v164_v14 = vpop.f32.mrb[0].mxu0 }
 0x12c   :  { %v165_v15 = vadd.f32 %v299_v13, %v164_v14  ;;  %v352_v16 = vpop.f32.mrb[1].mxu0 }
 0x12d   :  { %v167_v17 = vpop.f32.mrb[2].mxu0 }
 0x12e   :  { %v353_v18 = vpop.f32.mrb[3].mxu0  ;;  %v170_v19 = vmul.f32 %v165_v15, %v165_v15 }
 0x130   :  { %171 = vadd.xlane.f32.xlu0 %v170_v19 }
 0x1bd   :  { %v172_v25 = vpop.xlane.xlu0 %171 }
 0x1be   :  { %v173_v26 = vmax.f32 %v172_v25, 1e-24 }
 0x1c0   :  { %398 = vrsqrt.f32 %v173_v26 }
 0x1ca   :  { %v399_v27 = vpop.eup %398 }
 0x1cb   :  { %v175_v28 = vmul.f32 20.0, %v399_v27 }
 0x1cd   :  { %v176_v29 = vmul.f32 %v175_v28, %v165_v15 }
 0x1cf   :  { %v177_v30 = vpack.c.bf16 %v176_v29, %v176_v29 }
 0x1d1   :  { %371 = vmatmul.mubr.bf16.vlgmr.msra.gmra.mrb[0].mxu1 %v177_v30 }
 0x2a4   :  { %v276_v31 = vpop.f32.mrb[0].mxu1 }
 0x2a5   :  { %282 = vst [vmem:[#allocation8] sm:$0xff] %v276_v31  ;;  %v372_v32 = vpop.f32.mrb[1].mxu1 }
 0x2a6   :  { %v279_v33 = vpop.f32.mrb[2].mxu1 }
 0x2a7   :  { %477 = shalt.err (!%p474_p0)
}
 0x2a8   :  { %s478_s30 = scalar_lea.hbm %s588_s4, 128 }
 0x2a9   :  { %p479_p1 = scmp.ne.s32.totalorder %s588_s4, %s478_s30  ;;  %p482_p2 = scmp.lt.u32.totalorder %s478_s30, %s588_s4 }
 0x2ab   :  { %p484_p3 = pnand %p482_p2, %p479_p1 }
 0x2ad   :  { %487 = shalt.err (!%p484_p3)
}
 0x2ae   :  { %292 = dma.vmem_to_hbm [thread:$0]  %s290_s26, 128, %s588_s4, [#allocation4]   ;;  %v373_v34 = vpop.f32.mrb[3].mxu1 }
 0x2af   :  { %492 = dma.done.wait [#allocation4], 128  }
 0x2b0   :  { %493 = vsyncadd [#allocation4], 4294967168 }
 0x2b1   :  { %296 = vsyncpa [#allocation3], 1 }
 0x2b2   :  { %297 = vsyncpa [#allocation6], 1 }
 0x2b3   :  { %298 = vsyncpa [#allocation4], 1 }

</bundles_post_ra>
